<compile_context>
chip_gen: v7x
topology: tpu7x:2x2x1
jax: 0.10.0
libtpu: 0.0.40
codegen_flags: <defaults>
</compile_context>

<pallas_src>
import functools

import jax
import jax.numpy as jnp
from jax.experimental import pallas as pl
from jax.experimental.pallas import tpu as pltpu


def _deconv3d_kernel(p_ref, w_ref, gamma_ref, beta_ref, alpha_ref, o_ref,
                     *, s_tile, eps):
    """Grid = (N, S // s_tile).

    p_ref    : (1, K, s_tile)   im2col patch tile, K = 27*C_in
    w_ref    : (C_out, K)       folded conv weight
    gamma_ref: (C_out, 1)       InstanceNorm3d gamma
    beta_ref : (C_out, 1)       InstanceNorm3d beta
    alpha_ref: (C_out, 1)       PReLU per-channel slope
    o_ref    : (1, C_out, S)    resident across the S axis (same block index)
    """
    s = pl.program_id(1)

    # One MXU matmul per spatial tile: (C_out, K) @ (K, s_tile) -> (C_out, s_tile)
    acc = jnp.dot(w_ref[...], p_ref[0], preferred_element_type=jnp.float32)

    off = pl.multiple_of(s * s_tile, s_tile)
    o_ref[0, :, pl.ds(off, s_tile)] = acc

    # Finalize once the full (C_out, S) conv result for this sample is resident:
    # InstanceNorm (per-channel stats over spatial, biased variance) + affine
    # + per-channel PReLU.
    @pl.when(s == pl.num_programs(1) - 1)
    def _():
        y = o_ref[0]                                        # (C_out, S) f32
        mean = jnp.mean(y, axis=-1, keepdims=True)
        cent = y - mean
        var = jnp.mean(cent * cent, axis=-1, keepdims=True)
        z = cent * jax.lax.rsqrt(var + eps)
        z = z * gamma_ref[...] + beta_ref[...]
        z = jnp.where(z >= 0.0, z, alpha_ref[...] * z)      # PReLU
        o_ref[0] = z.astype(o_ref.dtype)


def _im2col_3x3x3(x_ncdhw):
    """(N, C_in, D, H, W) -> (N, 27*C_in, D*H*W) patch matrix (pad=1 per side).

    K ordering is tap-major, c_in-minor: k = (kd*3 + kh)*3*C_in + kw*C_in + c_in.
    """
    N, C_in, D, H, W = x_ncdhw.shape
    xp = jnp.pad(x_ncdhw, ((0, 0), (0, 0), (1, 1), (1, 1), (1, 1)))
    cols = []
    for kd in range(3):
        for kh in range(3):
            for kw in range(3):
                cols.append(
                    xp[:, :, kd:kd + D, kh:kh + H, kw:kw + W]
                    .reshape(N, C_in, D * H * W))
    return jnp.concatenate(cols, axis=1)


def _pick_s_tile(S, cap=4096):
    """Largest S-divisor that is a multiple of 128 (<= cap); else full extent."""
    if S % 128 != 0:
        return S
    best = 128
    t = 256
    while t <= min(S, cap):
        if S % t == 0:
            best = t
        t += 128
    return best


def deconv3d_forward(x_ncdhw, wt, gamma, beta, alpha, *, eps=1e-5, s_tile=None):
    """x_ncdhw: (N, C_in, D, H, W) float32
       wt     : (C_in, C_out, 3, 3, 3)  PyTorch ConvTranspose3d weight layout
       gamma, beta, alpha: (C_out,)
       returns (N, C_out, D, H, W)
    """
    N, C_in, D, H, W = x_ncdhw.shape
    C_out = wt.shape[1]
    S = D * H * W
    K = 27 * C_in

    if s_tile is None:
        s_tile = _pick_s_tile(S)
    assert S % s_tile == 0
    assert (s_tile % 128 == 0) or (s_tile == S)
    num_s = S // s_tile

    # ---- glue (plain JAX): im2col + folded 2-D weight ----------------------
    # ConvTranspose3d(k=3, s=1, p=1) == Conv3d with spatially flipped weight
    # and padding 1.
    p = _im2col_3x3x3(x_ncdhw.astype(jnp.float32))               # (N, K, S)
    w_conv = jnp.transpose(jnp.flip(wt, axis=(2, 3, 4)), (2, 3, 4, 0, 1))
    w2 = w_conv.reshape(K, C_out).T.astype(jnp.float32)          # (C_out, K)
    gamma2 = gamma.reshape(C_out, 1).astype(jnp.float32)
    beta2 = beta.reshape(C_out, 1).astype(jnp.float32)
    alpha2 = alpha.reshape(C_out, 1).astype(jnp.float32)

    kernel = functools.partial(_deconv3d_kernel, s_tile=s_tile, eps=eps)

    # VMEM budget: double-buffered patch tile + resident (C_out, S) output.
    vmem_est = (2 * K * s_tile * 4 + 2 * C_out * S * 4
                + 2 * C_out * K * 4 + 6 * C_out * 128 * 4)
    vmem_limit = int(min(max(4 * vmem_est, 8 * 1024 * 1024), 32 * 1024 * 1024))

    out_flat = pl.pallas_call(
        kernel,
        out_shape=jax.ShapeDtypeStruct((N, C_out, S), jnp.float32),
        grid_spec=pltpu.PrefetchScalarGridSpec(
            num_scalar_prefetch=0,
            grid=(N, num_s),
            in_specs=[
                pl.BlockSpec((1, K, s_tile), lambda n, s: (n, 0, s)),
                pl.BlockSpec((C_out, K), lambda n, s: (0, 0)),
                pl.BlockSpec((C_out, 1), lambda n, s: (0, 0)),
                pl.BlockSpec((C_out, 1), lambda n, s: (0, 0)),
                pl.BlockSpec((C_out, 1), lambda n, s: (0, 0)),
            ],
            out_specs=pl.BlockSpec((1, C_out, S), lambda n, s: (n, 0, 0)),
        ),
        compiler_params=pltpu.CompilerParams(
            dimension_semantics=("parallel", "arbitrary"),
            vmem_limit_bytes=vmem_limit),
    )(p, w2, gamma2, beta2, alpha2)

    return out_flat.reshape(N, C_out, D, H, W)


def _reference_forward(x_ncdhw, wt, gamma, beta, alpha, eps=1e-5):
    """Pure-JAX reference (same math, no Pallas)."""
    N, C_in, D, H, W = x_ncdhw.shape
    C_out = wt.shape[1]
    x = jnp.transpose(x_ncdhw, (0, 2, 3, 4, 1))
    xp = jnp.pad(x, ((0, 0), (1, 1), (1, 1), (1, 1), (0, 0)))
    w_conv = jnp.transpose(jnp.flip(wt, axis=(2, 3, 4)), (2, 3, 4, 0, 1))
    out = jnp.zeros((N, D, H, W, C_out), jnp.float32)
    for kd in range(3):
        for kh in range(3):
            for kw in range(3):
                patch = xp[:, kd:kd + D, kh:kh + H, kw:kw + W, :]
                out = out + jnp.einsum('ndhwc,co->ndhwo', patch,
                                       w_conv[kd, kh, kw])
    mean = jnp.mean(out, axis=(1, 2, 3), keepdims=True)
    var = jnp.mean((out - mean) ** 2, axis=(1, 2, 3), keepdims=True)
    xn = (out - mean) / jnp.sqrt(var + eps)
    y = xn * gamma + beta
    y = jnp.where(y >= 0, y, alpha * y)
    return jnp.transpose(y, (0, 4, 1, 2, 3))


if __name__ == "__main__":
    key = jax.random.PRNGKey(0)
    k_x, k_w, k_g, k_b, k_a = jax.random.split(key, 5)

    N, C_in, C_out = 2, 4, 8
    D = H = W = 8                                    # S = 512 (4 tiles of 128)

    x = jax.random.normal(k_x, (N, C_in, D, H, W), dtype=jnp.float32)
    # ConvTranspose3d.weight layout: (in_channel, out_channel, kD, kH, kW)
    wt = 0.1 * jax.random.normal(k_w, (C_in, C_out, 3, 3, 3), dtype=jnp.float32)
    gamma = 1.0 + 0.1 * jax.random.normal(k_g, (C_out,), dtype=jnp.float32)
    beta = 0.1 * jax.random.normal(k_b, (C_out,), dtype=jnp.float32)
    alpha = 0.25 + 0.05 * jax.random.normal(k_a, (C_out,), dtype=jnp.float32)

    ref = jax.block_until_ready(_reference_forward(x, wt, gamma, beta, alpha))

    # Multi-S-tile path (exercises resident-output accumulation + finalize).
    out_tiled = jax.block_until_ready(
        deconv3d_forward(x, wt, gamma, beta, alpha, s_tile=128))
    assert out_tiled.shape == (N, C_out, D, H, W)
    assert jnp.allclose(out_tiled, ref, rtol=1e-4, atol=1e-4), (
        float(jnp.max(jnp.abs(out_tiled - ref))))

    # Auto tile-size path (single full-extent S tile at this size).
    out_auto = jax.block_until_ready(
        deconv3d_forward(x, wt, gamma, beta, alpha))
    assert jnp.allclose(out_auto, ref, rtol=1e-4, atol=1e-4), (
        float(jnp.max(jnp.abs(out_auto - ref))))

    print("KERNEL_OK")
</pallas_src>

<mosaic_0001>
module attributes {stable_mosaic.version = 11 : i64} {
  func.func @_deconv3d_kernel(%arg0: i32, %arg1: i32, %arg2: memref<1x108x128xf32, #tpu.memory_space<vmem>>, %arg3: memref<8x108xf32, #tpu.memory_space<vmem>>, %arg4: memref<8x1xf32, #tpu.memory_space<vmem>>, %arg5: memref<8x1xf32, #tpu.memory_space<vmem>>, %arg6: memref<8x1xf32, #tpu.memory_space<vmem>>, %arg7: memref<1x8x512xf32, #tpu.memory_space<vmem>>) attributes {dimension_semantics = [#tpu.dimension_semantics<parallel>, #tpu.dimension_semantics<arbitrary>], iteration_bounds = array<i64: 2, 4>, scalar_prefetch = 0 : i64, scratch_operands = 0 : i64, tpu.core_type = #tpu.core_type<tc>, window_params = [{transform_indices = @transform_0, window_bounds = array<i64: 1, 108, 128>}, {pipeline_mode = #tpu.pipeline_mode<synchronous>, transform_indices = @transform_1, window_bounds = array<i64: 8, 108>}, {pipeline_mode = #tpu.pipeline_mode<synchronous>, transform_indices = @transform_2, window_bounds = array<i64: 8, 1>}, {pipeline_mode = #tpu.pipeline_mode<synchronous>, transform_indices = @transform_3, window_bounds = array<i64: 8, 1>}, {pipeline_mode = #tpu.pipeline_mode<synchronous>, transform_indices = @transform_4, window_bounds = array<i64: 8, 1>}, {transform_indices = @transform_5, window_bounds = array<i64: 1, 8, 512>}]} {
    %c0 = arith.constant 0 : index
    %c0_0 = arith.constant 0 : index
    %0 = vector.load %arg3[%c0, %c0_0] : memref<8x108xf32, #tpu.memory_space<vmem>>, vector<8x108xf32>
    %c0_1 = arith.constant 0 : index
    %c0_2 = arith.constant 0 : index
    %c0_3 = arith.constant 0 : index
    %1 = vector.load %arg2[%c0_1, %c0_2, %c0_3] : memref<1x108x128xf32, #tpu.memory_space<vmem>>, vector<1x108x128xf32>
    %2 = vector.shape_cast %1 : vector<1x108x128xf32> to vector<108x128xf32>
    %cst = arith.constant dense<0.000000e+00> : vector<8x128xf32>
    %3 = tpu.matmul %0, %2, %cst {dimension_numbers = #tpu.dot_dimension_numbers<[1], [0], [0], [1], [0, 0, 1, 1], [], []>} : vector<8x108xf32>, vector<108x128xf32>, vector<8x128xf32> -> vector<8x128xf32>
    %c128_i32 = arith.constant 128 : i32
    %4 = arith.muli %arg1, %c128_i32 : i32
    %5 = tpu.assume_multiple %4, 128 : i32
    %c0_4 = arith.constant 0 : index
    %c0_5 = arith.constant 0 : index
    %6 = arith.index_cast %5 : i32 to index
    %7 = vector.load %arg7[%c0_4, %c0_5, %6] : memref<1x8x512xf32, #tpu.memory_space<vmem>>, vector<1x8x128xf32>
    %8 = vector.shape_cast %7 : vector<1x8x128xf32> to vector<8x128xf32>
    %9 = vector.shape_cast %3 : vector<8x128xf32> to vector<1x8x128xf32>
    tpu.vector_store %arg7[%c0_4, %c0_5, %6], %9 {strides = array<i32>} : memref<1x8x512xf32, #tpu.memory_space<vmem>>, vector<1x8x128xf32>,
    %c3_i32 = arith.constant 3 : i32
    %10 = arith.cmpi eq, %arg1, %c3_i32 : i32
    %11 = arith.extui %10 : i1 to i32
    %c0_i32 = arith.constant 0 : i32
    %12 = arith.cmpi ne, %11, %c0_i32 : i32
    scf.if %12 {
      %c0_6 = arith.constant 0 : index
      %c0_7 = arith.constant 0 : index
      %c0_8 = arith.constant 0 : index
      %13 = vector.load %arg7[%c0_6, %c0_7, %c0_8] : memref<1x8x512xf32, #tpu.memory_space<vmem>>, vector<1x8x512xf32>
      %14 = vector.shape_cast %13 : vector<1x8x512xf32> to vector<8x512xf32>
      %cst_9 = arith.constant dense<0.000000e+00> : vector<8xf32>
      %15 = vector.multi_reduction <add>, %14, %cst_9 [1] : vector<8x512xf32> to vector<8xf32>
      %16 = vector.shape_cast %15 : vector<8xf32> to vector<8x1xf32>
      %cst_10 = arith.constant 5.120000e+02 : f32
      %17 = vector.broadcast %cst_10 : f32 to vector<8x1xf32>
      %18 = arith.divf %16, %17 : vector<8x1xf32>
      %19 = vector.broadcast %18 : vector<8x1xf32> to vector<8x512xf32>
      %20 = arith.subf %14, %19 : vector<8x512xf32>
      %21 = arith.mulf %20, %20 : vector<8x512xf32>
      %cst_11 = arith.constant dense<0.000000e+00> : vector<8xf32>
      %22 = vector.multi_reduction <add>, %21, %cst_11 [1] : vector<8x512xf32> to vector<8xf32>
      %23 = vector.shape_cast %22 : vector<8xf32> to vector<8x1xf32>
      %cst_12 = arith.constant 5.120000e+02 : f32
      %24 = vector.broadcast %cst_12 : f32 to vector<8x1xf32>
      %25 = arith.divf %23, %24 : vector<8x1xf32>
      %cst_13 = arith.constant 9.99999974E-6 : f32
      %26 = vector.broadcast %cst_13 : f32 to vector<8x1xf32>
      %27 = arith.addf %25, %26 : vector<8x1xf32>
      %28 = math.rsqrt %27 : vector<8x1xf32>
      %29 = vector.broadcast %28 : vector<8x1xf32> to vector<8x512xf32>
      %30 = arith.mulf %20, %29 : vector<8x512xf32>
      %c0_14 = arith.constant 0 : index
      %c0_15 = arith.constant 0 : index
      %31 = vector.load %arg4[%c0_14, %c0_15] : memref<8x1xf32, #tpu.memory_space<vmem>>, vector<8x1xf32>
      %32 = vector.broadcast %31 : vector<8x1xf32> to vector<8x512xf32>
      %33 = arith.mulf %30, %32 : vector<8x512xf32>
      %c0_16 = arith.constant 0 : index
      %c0_17 = arith.constant 0 : index
      %34 = vector.load %arg5[%c0_16, %c0_17] : memref<8x1xf32, #tpu.memory_space<vmem>>, vector<8x1xf32>
      %35 = vector.broadcast %34 : vector<8x1xf32> to vector<8x512xf32>
      %36 = arith.addf %33, %35 : vector<8x512xf32>
      %cst_18 = arith.constant 0.000000e+00 : f32
      %37 = vector.broadcast %cst_18 : f32 to vector<8x512xf32>
      %38 = arith.cmpf oge, %36, %37 : vector<8x512xf32>
      %c0_19 = arith.constant 0 : index
      %c0_20 = arith.constant 0 : index
      %39 = vector.load %arg6[%c0_19, %c0_20] : memref<8x1xf32, #tpu.memory_space<vmem>>, vector<8x1xf32>
      %40 = vector.broadcast %39 : vector<8x1xf32> to vector<8x512xf32>
      %41 = arith.mulf %40, %36 : vector<8x512xf32>
      %42 = arith.select %38, %36, %41 : vector<8x512xi1>, vector<8x512xf32>
      %c0_21 = arith.constant 0 : index
      %c0_22 = arith.constant 0 : index
      %c0_23 = arith.constant 0 : index
      %43 = vector.load %arg7[%c0_21, %c0_22, %c0_23] : memref<1x8x512xf32, #tpu.memory_space<vmem>>, vector<1x8x512xf32>
      %44 = vector.shape_cast %43 : vector<1x8x512xf32> to vector<8x512xf32>
      %45 = vector.shape_cast %42 : vector<8x512xf32> to vector<1x8x512xf32>
      tpu.vector_store %arg7[%c0_21, %c0_22, %c0_23], %45 {strides = array<i32>} : memref<1x8x512xf32, #tpu.memory_space<vmem>>, vector<1x8x512xf32>,
    } else {
    }
    return
  }
  func.func @transform_0(%arg0: i32, %arg1: i32) -> (i32, i32, i32) {
    %c0_i32 = arith.constant 0 : i32
    %c0_i32_0 = arith.constant 0 : i32
    return %arg0, %c0_i32, %arg1 : i32, i32, i32
  }
  func.func @transform_1(%arg0: i32, %arg1: i32) -> (i32, i32) {
    %c0_i32 = arith.constant 0 : i32
    %c0_i32_0 = arith.constant 0 : i32
    %c0_i32_1 = arith.constant 0 : i32
    return %c0_i32, %c0_i32_0 : i32, i32
  }
  func.func @transform_2(%arg0: i32, %arg1: i32) -> (i32, i32) {
    %c0_i32 = arith.constant 0 : i32
    %c0_i32_0 = arith.constant 0 : i32
    %c0_i32_1 = arith.constant 0 : i32
    return %c0_i32, %c0_i32_0 : i32, i32
  }
  func.func @transform_3(%arg0: i32, %arg1: i32) -> (i32, i32) {
    %c0_i32 = arith.constant 0 : i32
    %c0_i32_0 = arith.constant 0 : i32
    %c0_i32_1 = arith.constant 0 : i32
    return %c0_i32, %c0_i32_0 : i32, i32
  }
  func.func @transform_4(%arg0: i32, %arg1: i32) -> (i32, i32) {
    %c0_i32 = arith.constant 0 : i32
    %c0_i32_0 = arith.constant 0 : i32
    %c0_i32_1 = arith.constant 0 : i32
    return %c0_i32, %c0_i32_0 : i32, i32
  }
  func.func @transform_5(%arg0: i32, %arg1: i32) -> (i32, i32, i32) {
    %c0_i32 = arith.constant 0 : i32
    %c0_i32_0 = arith.constant 0 : i32
    %c0_i32_1 = arith.constant 0 : i32
    return %arg0, %c0_i32, %c0_i32_0 : i32, i32, i32
  }
}

</mosaic_0001>

<bundles_post_ra>
// kernel: tpu_custom_call.1
= control target key start
LH: loop header
LB: loop body
LE: loop exit
PB: predicated region body
PF: predicated region fallthrough
CT: control target
= control target key end

     0   :  { %10 = vsyncpa [#allocation4], 0  ;;  %s1119_s0 = inlined_call_operand.vmem [shape: f32[2,108,512], index: 0, kind: input, shape index: {}]   ;;  %s1120_s1 = inlined_call_operand.vmem [shape: f32[8,108], index: 1, kind: input, shape index: {}]   ;;  %s1121_s2 = inlined_call_operand.vmem [shape: f32[8,1], index: 2, kind: input, shape index: {}]   ;;  %s1122_s3 = inlined_call_operand.vmem [shape: f32[8,1], index: 3, kind: input, shape index: {}]   ;;  %s1123_s4 = inlined_call_operand.vmem [shape: f32[8,1], index: 4, kind: input, shape index: {}]   ;;  %s1124_s5 = inlined_call_operand.hbm [shape: f32[2,8,512], index: 5, kind: output, shape index: {}]  }
   0x1   :  { %12 = vsyncpa [#allocation4 + $0x1], 0  ;;  %s929_s18 = smov 0   ;;  %s931_s19 = smov 0  }
   0x2   :  { %s933_s20 = smov 0   ;;  %s935_s21 = smov 0  }
   0x3   :  { %s937_s22 = smov 0   ;;  %s939_s23 = smov 0  }
   0x4   :  { %s941_s24 = smov 0   ;;  %s943_s25 = smov 0  }
   0x5   :  { %s945_s26 = smov 0   ;;  %s947_s27 = smov 0  }
   0x6 LB: > { %s596_s28 = sadd.s32 4294967295, %s891_s27   ;;  %s597_s29 = sadd.s32 4294967294, %s891_s27   ;;  %s891_s27 = sphi %s947_s27, %s18_s27   ;;  %s887_s26 = sphi %s945_s26, %s1139_s26   ;;  %s883_s25 = sphi %s943_s25, %s1138_s25   ;;  %s879_s24 = sphi %s941_s24, %s1137_s24   ;;  %s875_s23 = sphi %s939_s23, %s1136_s23   ;;  %s871_s22 = sphi %s937_s22, %s1135_s22   ;;  %s867_s21 = sphi %s935_s21, %s1134_s21   ;;  %s863_s20 = sphi %s933_s20, %s1133_s20   ;;  %s859_s19 = sphi %s931_s19, %s1132_s19   ;;  %s855_s18 = sphi %s929_s18, %s1131_s18  }
   0x7   : > { %s27_s30 = sadd.s32 1, %s883_s25  ;;  %s30_s6 = sadd.s32 1, %s887_s26 }
   0x8   : > { %p28_p0 = scmp.ge.s32.totalorder %s27_s30, 4  ;;  %s39_s7 = sadd.s32 1, %s871_s22 }
   0x9   : > { %p46_p1 = scmp.ne.s32.totalorder %s871_s22, %s867_s21  ;;  %p47_p2 = scmp.eq.s32.totalorder %s891_s27, 0 }
   0xa   : > { %s1141_s30 = smov (%p28_p0, %s27_s30), 0  ;;  %s1143_s6 = smov (!%p28_p0, %s30_s6), %s887_s26 }
   0xb   : > { %s35_s8 = ssub.s32 %s883_s25, %s1141_s30  ;;  %p992_p3 = por %p47_p2, %p46_p1 }
   0xc   : > { %p32_p4 = scmp.ge.s32.totalorder %s1143_s6, 2  ;;  %s149_s10 = sadd.s32 1, %s863_s20 }
   0xd   : > { %p159_p5 = scmp.ne.s32.totalorder %s863_s20, %s859_s19  ;;  %p160_p6 = scmp.eq.s32.totalorder %s596_s28, 7 }
   0xe   : > { %s1145_s6 = smov (%p32_p4, %s1143_s6), 0  ;;  %p165_p8 = scmp.ne.s32.totalorder %s859_s19, %s855_s18 }
   0xf   : > { %1127 = sst [smem:[#allocation6_spill]] %s1145_s6  ;;  %p1001_p7 = por %p160_p6, %p159_p5 }
  0x10   : > { %s34_s12 = ssub.s32 %s887_s26, %s1145_s6  ;;  %p166_p9 = scmp.eq.s32.totalorder %s597_s29, 7 }
  0x11   : > { %s36_s13 = sor.u32 %s35_s8, %s34_s12  ;;  %p147_p10 = scmp.eq.s32.totalorder %s34_s12, 0 }
  0x12   : > { %p37_p11 = scmp.eq.s32.totalorder %s36_s13, 0  ;;  %p1009_p12 = por %p166_p9, %p165_p8 }
  0x13   : > { %s1014_s15 = scalar_select %p147_p10, %s863_s20, %s149_s10  }
  0x14   : > { %s1017_s16 = scalar_select %p37_p11, %s871_s22, %s39_s7  }
  0x15   : > { %p599_p13 = scmp.ge.s32.totalorder %s891_s27, 8 }
  0x17   : > { %194 = sbr.rel (%p599_p13) target bundleno = 51 (0x33), region = 32 }
  0x1e   : > { %197 = sbr.rel (!%p992_p3) target bundleno = 51 (0x33), region = 36  ;;  %s199_s17 = sand.u32 (%p992_p3), 1, %s871_s22  }
  0x1f   : > { %s683_s28 = smul.u32 (%p992_p3), 56, %s887_s26 }
  0x20   : > { %s682_s29 = smul.u32 (%p992_p3), 112, %s199_s17 }
  0x21   : > { %s203_s8 = sadd.s32 (%p992_p3), %s883_s25, %s683_s28 }
  0x22   : > { %s600_s12 = sshll.u32 (%p992_p3), %s203_s8, 3  ;;  %s201_s7 = scalar_lea.vmem (%p992_p3), [#allocation2], %s682_s29 }
  0x23   : > { %s205_s10 = scalar_lea.vmem (%p992_p3), %s1119_s0, %s600_s12 }
  0x24   : > { %v259_v0 = vld [vmem:[%s205_s10] sm:$0xff] (%p992_p3) }
  0x25   : > { %v261_v1 = vld [vmem:[%s205_s10 + $0x20] sm:$0xff]  ;;  %260 = vst [vmem:[%s201_s7] sm:$0xff] %v259_v0 }
  0x26   : > { %v263_v2 = vld [vmem:[%s205_s10 + $0x40] sm:$0xff]  ;;  %262 = vst [vmem:[%s201_s7 + $0x8] sm:$0xff] %v261_v1 }
  0x27   : > { %264 = vst [vmem:[%s201_s7 + $0x10] sm:$0xff] %v263_v2  ;;  %v265_v3 = vld [vmem:[%s205_s10 + $0x60] sm:$0xff] }
  0x28   : > { %v267_v4 = vld [vmem:[%s205_s10 + $0x80] sm:$0xff]  ;;  %266 = vst [vmem:[%s201_s7 + $0x18] sm:$0xff] %v265_v3 }
  0x29   : > { %v269_v5 = vld [vmem:[%s205_s10 + $0xa0] sm:$0xff]  ;;  %268 = vst [vmem:[%s201_s7 + $0x20] sm:$0xff] %v267_v4 }
  0x2a   : > { %270 = vst [vmem:[%s201_s7 + $0x28] sm:$0xff] %v269_v5  ;;  %v271_v6 = vld [vmem:[%s205_s10 + $0xc0] sm:$0xff] }
  0x2b   : > { %v273_v7 = vld [vmem:[%s205_s10 + $0xe0] sm:$0xff]  ;;  %272 = vst [vmem:[%s201_s7 + $0x30] sm:$0xff] %v271_v6 }
  0x2c   : > { %v275_v8 = vld [vmem:[%s205_s10 + $0x100] sm:$0xff]  ;;  %274 = vst [vmem:[%s201_s7 + $0x38] sm:$0xff] %v273_v7 }
  0x2d   : > { %276 = vst [vmem:[%s201_s7 + $0x40] sm:$0xff] %v275_v8  ;;  %v277_v9 = vld [vmem:[%s205_s10 + $0x120] sm:$0xff] }
  0x2e   : > { %v279_v10 = vld [vmem:[%s205_s10 + $0x140] sm:$0xff]  ;;  %278 = vst [vmem:[%s201_s7 + $0x48] sm:$0xff] %v277_v9 }
  0x2f   : > { %v281_v11 = vld [vmem:[%s205_s10 + $0x160] sm:$0xff]  ;;  %280 = vst [vmem:[%s201_s7 + $0x50] sm:$0xff] %v279_v10 }
  0x30   : > { %282 = vst [vmem:[%s201_s7 + $0x58] sm:$0xff] %v281_v11  ;;  %v283_v12 = vld [vmem:[%s205_s10 + $0x180] sm:$0xff] }
  0x31   : > { %v285_v13 = vld [vmem:[%s205_s10 + $0x1a0] sm:$0xff]  ;;  %284 = vst [vmem:[%s201_s7 + $0x60] sm:$0xff] %v283_v12 }
  0x32   : > { %286 = vst [vmem:[%s201_s7 + $0x68] sm:$0xff] %v285_v13 }
  0x33 PF: > { %p601_p0 = scmp.ge.s32.totalorder %s891_s27, 1  ;;  %p291_p1 = scmp.lt.s32.totalorder %s891_s27, 9 }
  0x35   : > { %p292_p2 = pnand %p601_p0, %p291_p1 }
  0x36   : > { %s298_s6 = sand.u32 (!%p292_p2), 1, %s867_s21   ;;  %v893_v14 = vmov (!%p292_p2), 0.0|0.0   ;;  %vm894_vm0 = vmmov (!%p292_p2), 0   ;;  %v895_v15 = vmov (!%p292_p2), 0.0   ;;  %vm344_vm1 = vcmask (!%p292_p2), 1043456   ;;  %v325_v37 = vld [vmem:[%s1120_s1] sm:$0xff] (!%p292_p2) }
  0x37   : > { %295 = sbr.rel (%p292_p2) target bundleno = 662 (0x296), region = 74  ;;  %660 = vmatprep.subr.bf16.mxu0 (!%p292_p2), %v893_v14  ;;  %657 = vmatprep.mubr.msk.f32.mxu0 (!%p292_p2), %vm894_vm0, %v895_v15  ;;  %vm896_vm2 = vmmov (!%p292_p2), 1   ;;  %vm340_vm4 = vcmask (!%p292_p2), 883712   ;;  %s322_s29 = sand.u32 (!%p292_p2), 1, %s859_s19  }
  0x38   : > { %s684_s9 = smul.u32 (!%p292_p2), 112, %s298_s6  ;;  %vm680_vm3 = vmpackc.low (!%p292_p2), %vm344_vm1, %vm896_vm2  ;;  %s605_s8 = sshll.u32 (!%p292_p2), %s875_s23, 7 }
  0x39   : > { %s602_s12 = sshll.u32 (!%p292_p2), %s322_s29, 5  ;;  %s419_s13 = sshra.s32 (!%p292_p2), %s605_s8, 7 }
  0x3a   : > { %s300_s17 = scalar_lea.vmem (!%p292_p2), [#allocation2], %s684_s9  ;;  %s606_s10 = sshll.u32 (!%p292_p2), %s419_s13, 3 }
  0x3b   : > { %v326_v16 = vld [vmem:[%s300_s17] sm:$0xff] (!%p292_p2)  ;;  %v327_v17 = vld [vmem:[%s300_s17 + $0x8] sm:$0xff] (!%p292_p2)  ;;  %v328_v18 = vld [vmem:[%s300_s17 + $0x10] sm:$0xff] (!%p292_p2)  ;;  %s1038_s7 = scalar_lea.vmem (!%p292_p2), [#allocation3], %s602_s12  ;;  %p607_p3 = scmp.ne.s32.totalorder (!%p292_p2), %s875_s23, 3 }
  0x3c   : > { %v661_v19 = vpack.c.bf16 (!%p292_p2), %v327_v17, %v326_v16  ;;  %v329_v20 = vld [vmem:[%s300_s17 + $0x18] sm:$0xff] (!%p292_p2)  ;;  %v330_v22 = vld [vmem:[%s300_s17 + $0x20] sm:$0xff] (!%p292_p2)  ;;  %v331_v23 = vld [vmem:[%s300_s17 + $0x28] sm:$0xff] (!%p292_p2)  ;;  %s422_s6 = scalar_lea.vmem (!%p292_p2), %s1038_s7, %s606_s10 [#allocation3] }
  0x3d   : > { %v664_v21 = vpack.c.bf16 (!%p292_p2), %v329_v20, %v328_v18  ;;  %v667_v24 = vpack.c.bf16 (!%p292_p2), %v331_v23, %v330_v22  ;;  %v332_v25 = vld [vmem:[%s300_s17 + $0x30] sm:$0xff] (!%p292_p2)  ;;  %v333_v26 = vld [vmem:[%s300_s17 + $0x38] sm:$0xff] (!%p292_p2)  ;;  %v334_v28 = vld [vmem:[%s300_s17 + $0x40] sm:$0xff] (!%p292_p2) }
  0x3e   : > { %662 = vmatpush3.bf16.msra.mxu0 %v661_v19  ;;  %v670_v27 = vpack.c.bf16 %v333_v26, %v332_v25  ;;  %v335_v29 = vld [vmem:[%s300_s17 + $0x48] sm:$0xff]  ;;  %v336_v31 = vld [vmem:[%s300_s17 + $0x50] sm:$0xff]  ;;  %v337_v32 = vld [vmem:[%s300_s17 + $0x58] sm:$0xff]  ;;  %v897_v48 = vmov (!%p607_p3), 0  }
  0x3f   : > { %663 = vmatprep.subr.bf16.mxu0 %v893_v14  ;;  %v673_v30 = vpack.c.bf16 %v335_v29, %v334_v28  ;;  %v676_v33 = vpack.c.bf16 %v337_v32, %v336_v31  ;;  %v338_v34 = vld [vmem:[%s300_s17 + $0x60] sm:$0xff]  ;;  %v339_v35 = vld [vmem:[%s300_s17 + $0x68] sm:$0xf]  ;;  %777 = vset.pattern.permute.xlu1 (!%p607_p3), %v897_v48 }
  0x40   : > { %v679_v36 = vpack.c.bf16 %v339_v35, %v338_v34  ;;  %v459_v47 = vld [vmem:[%s1121_s2] sm:$0xff] (!%p607_p3)  ;;  %778 = vset.pattern.permute.xlu0 (!%p607_p3), %v897_v48 }
  0x41   : > { %462 = vperm.xlu1 (!%p607_p3), %777, %v459_v47   ;;  %v469_v49 = vld [vmem:[%s1122_s3] sm:$0xff] (!%p607_p3) }
  0x42   : > { %665 = vmatpush3.bf16.msra.mxu0 %v664_v21  ;;  %v483_v63 = vld [vmem:[%s1123_s4] sm:$0xff] (!%p607_p3) }
  0x43   : > { %666 = vmatprep.subr.bf16.mxu0 %v893_v14 }
  0x45   : > { %472 = vperm.xlu1 (!%p607_p3), %777, %v469_v49  }
  0x46   : > { %668 = vmatpush3.bf16.msra.mxu0 %v667_v24 }
  0x47   : > { %669 = vmatprep.subr.bf16.mxu0 %v893_v14 }
  0x4a   : > { %671 = vmatpush3.bf16.msra.mxu0 %v670_v27 }
  0x4b   : > { %672 = vmatprep.subr.bf16.mxu0 %v893_v14 }
  0x4e   : > { %674 = vmatpush3.bf16.msra.mxu0 %v673_v30 }
  0x4f   : > { %675 = vmatprep.subr.bf16.mxu0 %v893_v14 }
  0x52   : > { %677 = vmatpush3.bf16.msra.mxu0 %v676_v33 }
  0x53   : > { %678 = vmatprep.subr.bf16.mxu0 %v893_v14 }
  0x56   : > { %681 = vmatpush3.bf16.msk.msra.mxu0 %vm680_vm3, %v679_v36 }
  0x59   : > { %658 = vmatmul.mubr.msk.f32.vlgmr.msra.gmra.mrb[0].mxu0 %vm340_vm4, %v325_v37 }
  0xc0   : > { %v463_v3 = vpop.permute.xlu1 (!%p607_p3), %462 }
  0xc4   : > { %v473_v13 = vpop.permute.xlu1 (!%p607_p3), %472 }
 0x127   : > { %427 = sbr.rel (%p607_p3) target bundleno = 638 (0x27e), region = 82 }
 0x12c   : > { %v414_v38 = vpop.f32.mrb[0].mxu0 }
 0x12d   : > { %423 = vst [vmem:[%s422_s6] sm:$0xff] %v414_v38  ;;  %v659_v39 = vpop.f32.mrb[1].mxu0 }
 0x134   : > { %v428_v40 = vld [vmem:[%s1038_s7] sm:$0xff]  ;;  %v429_v41 = vld [vmem:[%s1038_s7 + $0x8] sm:$0xff]  ;;  %v430_v42 = vld [vmem:[%s1038_s7 + $0x10] sm:$0xff] }
 0x135   : > { %v432_v43 = vadd.f32 %v429_v41, %v428_v40  ;;  %v431_v44 = vld [vmem:[%s1038_s7 + $0x18] sm:$0xff] }
 0x137   : > { %v433_v45 = vadd.f32 %v432_v43, %v430_v42 }
 0x139   : > { %v434_v46 = vadd.f32 %v433_v45, %v431_v44 }
 0x13b   : > { %435 = vadd.xlane.f32.xlu0 %v434_v46 }
 0x1c8   : > { %v436_v50 = vpop.xlane.xlu0 %435 }
 0x1c9   : > { %v438_v51 = vmul.f32 0.001953125, %v436_v50 }
 0x1cb   : > { %v439_v52 = vsub.f32 %v428_v40, %v438_v51  ;;  %v440_v53 = vsub.f32 %v429_v41, %v438_v51  ;;  %v441_v54 = vsub.f32 %v430_v42, %v438_v51  ;;  %v442_v55 = vsub.f32 %v431_v44, %v438_v51 }
 0x1cd   : > { %v443_v56 = vmul.f32 %v439_v52, %v439_v52  ;;  %v444_v57 = vmul.f32 %v440_v53, %v440_v53  ;;  %v445_v58 = vmul.f32 %v441_v54, %v441_v54  ;;  %v446_v60 = vmul.f32 %v442_v55, %v442_v55 }
 0x1cf   : > { %v447_v59 = vadd.f32 %v444_v57, %v443_v56 }
 0x1d1   : > { %v448_v61 = vadd.f32 %v447_v59, %v445_v58 }
 0x1d3   : > { %v449_v62 = vadd.f32 %v448_v61, %v446_v60 }
 0x1d5   : > { %450 = vadd.xlane.f32.xlu0 %v449_v62 }
 0x1eb   : > { %486 = vperm.xlu0 %778, %v483_v63  }
 0x262   : > { %v451_v0 = vpop.xlane.xlu0 %450 }
 0x263   : > { %v452_v1 = vmul.f32 0.001953125, %v451_v0 }
 0x265   : > { %v453_v2 = vadd.f32 1e-05, %v452_v1 }
 0x267   : > { %779 = vrsqrt.f32 %v453_v2 }
 0x26a   : > { %v487_v18 = vpop.permute.xlu0 %486 }
 0x271   : > { %v780_v4 = vpop.eup %779 }
 0x272   : > { %v455_v5 = vmul.f32 %v780_v4, %v439_v52  ;;  %v456_v6 = vmul.f32 %v780_v4, %v440_v53  ;;  %v457_v7 = vmul.f32 %v780_v4, %v441_v54  ;;  %v458_v8 = vmul.f32 %v780_v4, %v442_v55 }
 0x274   : > { %v465_v9 = vmul.f32 %v463_v3, %v455_v5  ;;  %v466_v10 = vmul.f32 %v463_v3, %v456_v6  ;;  %v467_v11 = vmul.f32 %v463_v3, %v457_v7  ;;  %v468_v12 = vmul.f32 %v463_v3, %v458_v8 }
 0x276   : > { %v475_v14 = vadd.f32 %v473_v13, %v465_v9  ;;  %v476_v15 = vadd.f32 %v473_v13, %v466_v10  ;;  %v477_v16 = vadd.f32 %v473_v13, %v467_v11  ;;  %v478_v17 = vadd.f32 %v473_v13, %v468_v12 }
 0x278   : > { %vm479_vm5 = vcmp.ge.f32.partialorder %v475_v14, 0.0  ;;  %vm480_vm6 = vcmp.ge.f32.partialorder %v476_v15, 0.0  ;;  %vm481_vm7 = vcmp.ge.f32.partialorder %v477_v16, 0.0  ;;  %vm482_vm8 = vcmp.ge.f32.partialorder %v478_v17, 0.0 }
 0x279   : > { %v489_v19 = vmul.f32 %v487_v18, %v475_v14  ;;  %v490_v20 = vmul.f32 %v487_v18, %v476_v15  ;;  %v491_v21 = vmul.f32 %v487_v18, %v477_v16  ;;  %v492_v22 = vmul.f32 %v487_v18, %v478_v17 }
 0x27b   : > { %v493_v23 = vsel %vm479_vm5, %v475_v14, %v489_v19  ;;  %v494_v24 = vsel %vm480_vm6, %v476_v15, %v490_v20  ;;  %v495_v25 = vsel %vm481_vm7, %v477_v16, %v491_v21  ;;  %v496_v26 = vsel %vm482_vm8, %v478_v17, %v492_v22 }
 0x27c   : > { %497 = vst [vmem:[%s1038_s7] sm:$0xff] %v493_v23  ;;  %498 = vst [vmem:[%s1038_s7 + $0x8] sm:$0xff] %v494_v24 }
 0x27d   : > { %499 = vst [vmem:[%s1038_s7 + $0x10] sm:$0xff] %v495_v25  ;;  %500 = vst [vmem:[%s1038_s7 + $0x18] sm:$0xff] %v496_v26 }
 0x27e PF: > { %s613_s12 = sshll.u32 %s879_s24, 9  ;;  %s516_s9 = sshll.u32 %s1038_s7, 4  ;;  %s517_s9 = int_to_ptr.vmem [resolvable:$true] %s516_s9 }
 0x27f   : > { %s1063_s6 = scalar_lea.hbm %s1124_s5, %s613_s12  ;;  %s502_s17 = scalar_lea.sflag [#allocation4], %s322_s29 }
 0x280   : > { %s781_s23 = scalar_lea.vmem %s517_s9, 512  ;;  %s898_s21 = smov [#allocation3]  }
 0x281   : > { %p782_p4 = scmp.ne.s32.totalorder %s517_s9, %s781_s23  ;;  %s785_s28 = sshll.u32 %s898_s21, 4  ;;  %s786_s28 = int_to_ptr.vmem [resolvable:$false] %s785_s28 }
 0x282   : > { %s787_s8 = scalar_lea.vmem %s786_s28, 1024  ;;  %p788_p8 = scmp.lt.s32.totalorder %s517_s9, %s786_s28 }
 0x283   : > { %p783_p5 = pnand %p782_p4, %p1001_p7  ;;  %p789_p9 = scmp.lt.s32.totalorder %s787_s8, %s781_s23 }
 0x285   : > { %p784_p6 = pneg %p783_p5  ;;  %p790_p10 = por %p789_p9, %p788_p8 }
 0x287   : > { %p791_p11 = pnand %p790_p10, %p784_p6 }
 0x289   : > { %794 = shalt.err (!%p791_p11)
}
 0x28a   : > { %s795_s24 = scalar_lea.hbm %s1063_s6, 512  ;;  %s799_s12 = scalar_lea.hbm %s1124_s5, 1024 }
 0x28b   : > { %p796_p13 = scmp.ne.s32.totalorder %s1063_s6, %s795_s24  ;;  %p800_p2 = scmp.lt.u32.totalorder %s1063_s6, %s1124_s5 }
 0x28c   : > { %p801_p3 = scmp.lt.u32.totalorder %s799_s12, %s795_s24  ;;  %p803_p5 = scmp.lt.u32.totalorder %s795_s24, %s1063_s6 }
 0x28d   : > { %p797_p0 = pnand %p796_p13, %p1001_p7 }
 0x28e   : > { %p802_p4 = por %p801_p3, %p800_p2 }
 0x28f   : > { %p798_p1 = pneg %p797_p0 }
 0x290   : > { %p804_p6 = por %p803_p5, %p802_p4 }
 0x292   : > { %p805_p8 = pnand %p804_p6, %p798_p1 }
 0x294   : > { %808 = shalt.err (!%p805_p8)
}
 0x295   : > { %685 = dma.vmem_to_hbm [thread:$0]  (%p1001_p7), %s517_s9, 512, %s1063_s6, %s502_s17  }
 0x296 PF: > { %p691_p9 = scmp.ge.s32.totalorder %s891_s27, 2  ;;  %s528_s23 = sand.u32 1, %s855_s18  }
 0x297   : > { %s529_s21 = scalar_lea.sflag [#allocation4], %s528_s23 }
 0x298   : > { %p688_p10 = pnand %p691_p9, %p1009_p12 }
 0x29a   : > { %850 = dma.done.wait (!%p688_p10), %s529_s21, 512  }
 0x29b   : > { %852 = vsyncadd (!%p688_p10), %s529_s21, 4294966784  ;;  %s18_s27 = sadd.s32 1, %s891_s27   ;;  %s1130_s11 = sld [smem:[#allocation6_spill]] }
 0x29c   : > { %p15_p11 = scmp.ge.s32.totalorder %s18_s27, 10   ;;  %s1131_s18 = smov %s859_s19 }
 0x29d   : > { %s1132_s19 = smov %s863_s20  ;;  %s1133_s20 = smov %s1014_s15 }
 0x29e   : > { %s1134_s21 = smov %s871_s22  ;;  %s1135_s22 = smov %s1017_s16 }
 0x29f   : > { %s1136_s23 = smov %s883_s25  ;;  %s1137_s24 = smov %s887_s26 }
 0x2a0   : > { %s1138_s25 = smov %s1141_s30  ;;  %17 = sbr.rel (!%p15_p11) target bundleno = 6 (0x6), region = 123 }
 0x2a1   : > { %s1139_s26 = smov %s1130_s11 }
 0x2a7   :  { %534 = vsyncpa [#allocation4], 1 }
 0x2a8   :  { %536 = vsyncpa [#allocation4 + $0x1], 1 }

</bundles_post_ra>
